<compile_context>
chip_gen: v7x
topology: tpu7x:2x2x1
jax: 0.10.0
libtpu: 0.0.40
codegen_flags: <defaults>
</compile_context>

<pallas_src>
import jax
import jax.numpy as jnp
from jax.experimental import pallas as pl
from jax.experimental.pallas import tpu as pltpu


def _assign_kernel(t2_ref, t1_ref):
    # self.t1 = self.t2  -> single scalar move through SMEM (scalar path).
    t1_ref[0] = t2_ref[0]
    # self.callee(self.t1, self.t2) -> body is `pass`; nothing to lower.
    # TODO(synk): callee is an empty method; no ops exist for it.


def test_module_forward(t2: jax.Array) -> jax.Array:
    """Returns the new value of self.t1 after forward() runs."""
    return pl.pallas_call(
        _assign_kernel,
        out_shape=jax.ShapeDtypeStruct(t2.shape, t2.dtype),
        # Whole (1,) array lives in SMEM for both input and output; no tiling,
        # no grid, no VMEM round-trip for a single 4-byte scalar.
        in_specs=[pl.BlockSpec(memory_space=pltpu.SMEM)],
        out_specs=pl.BlockSpec(memory_space=pltpu.SMEM),
        # Output aliases the input buffer: the "copy" is metadata-only at the
        # HBM level (mirrors the rebinding semantics of `self.t1 = self.t2`).
        input_output_aliases={0: 0},
    )(t2)


if __name__ == "__main__":
    # Deterministic parameter init mirroring __init__:
    #   self.t1 = torch.ones(1); self.t2 = torch.ones(1)
    key = jax.random.PRNGKey(0)  # unused for values (module uses ones); kept for convention
    t2 = jnp.ones((1,), dtype=jnp.float32)
    expected = jnp.ones((1,), dtype=jnp.float32)

    new_t1 = jax.block_until_ready(test_module_forward(t2))

    # NOTE: t2 may have been donated to the aliased output; compare against a
    # fresh constant rather than re-reading t2.
    assert new_t1.shape == (1,)
    assert new_t1.dtype == jnp.float32
    assert bool(jnp.all(new_t1 == expected))

    print("KERNEL_OK")
</pallas_src>

<mosaic_0001>
module attributes {stable_mosaic.version = 11 : i64} {
  func.func @_assign_kernel(%arg0: memref<1xf32, #tpu.memory_space<smem>>, %arg1: memref<1xf32, #tpu.memory_space<smem>>) attributes {dimension_semantics = [], scalar_prefetch = 0 : i64, scratch_operands = 0 : i64, tpu.core_type = #tpu.core_type<tc>} {
    %c0 = arith.constant 0 : index
    %0 = memref.load %arg0[%c0] : memref<1xf32, #tpu.memory_space<smem>>
    %c0_0 = arith.constant 0 : index
    %1 = memref.load %arg1[%c0_0] : memref<1xf32, #tpu.memory_space<smem>>
    memref.store %0, %arg1[%c0_0] : memref<1xf32, #tpu.memory_space<smem>>
    return
  }
}

</mosaic_0001>

<bundles_post_ra>
// kernel: tpu_custom_call.1
= control target key start
LH: loop header
LB: loop body
LE: loop exit
PB: predicated region body
PF: predicated region fallthrough
CT: control target
= control target key end

     0   :  { %7 = vsyncpa [#allocation4], 0  ;;  %s65_s0 = inlined_call_operand.<no memory space> [shape: f32[1], index: 0, kind: input, shape index: {}, may-alias: {0,1}]   ;;  %s66_s1 = inlined_call_operand.hbm [shape: f32[1], index: 1, kind: output, shape index: {}, may-alias: {0,1}]  }
   0x1   :  { %12 = sst [smem:[#allocation3]] %s65_s0  ;;  %s27_s10 = scalar_lea.hbm %s66_s1, 16 }
   0x2   :  { %p28_p0 = scmp.ne.s32.totalorder %s66_s1, %s27_s10  ;;  %p31_p1 = scmp.lt.u32.totalorder %s27_s10, %s66_s1 }
   0x4   :  { %p33_p2 = pnand %p31_p1, %p28_p0 }
   0x6   :  { %36 = shalt.err (!%p33_p2)
}
   0x7   :  { %s39_s15 = smov [#allocation3]  }
   0x8   :  { %20 = dma.smem_to_hbm %s39_s15, 16, %s66_s1, [#allocation4]  }
   0x9   :  { %37 = dma.done.wait [#allocation4], 16  }
   0xa   :  { %38 = vsyncadd [#allocation4], 4294967280 }
   0xb   :  { %24 = sfence }
   0xc   :  { %25 = vsyncpa [#allocation4], 1 }

</bundles_post_ra>
